<compile_context>
chip_gen: v7x
topology: tpu7x:2x2x1
jax: 0.10.0
libtpu: 0.0.40
codegen_flags: <defaults>
</compile_context>

<pallas_src>
import jax
import jax.numpy as jnp
from jax import lax
from jax.experimental import pallas as pl
from jax.experimental.pallas import tpu as pltpu

_B_TILE = 128


def _round_up(x, m):
    return ((x + m - 1) // m) * m


def _crf_kernel(em_ref, tags_ref, mask_ref, start_ref, end_ref,
                trans_t_ref, expt_ref, colmax_ref,
                nll_ref,
                alpha_ref, score_ref, last_ref, prev_ref):
    """One (batch-tile, L-tile) block of the CRF NLL.

    em_ref:    (L_TILE, T, B_TILE) f32   emissions: time x tag x batch(lanes)
    tags_ref:  (L_TILE, B_TILE)    i32
    mask_ref:  (L_TILE, B_TILE)    f32
    start_ref / end_ref / colmax_ref: (T, 1) f32
    trans_t_ref: (T, T) f32   trans_t[c, p] = transitions[p, c]
    expt_ref:    (T, T) f32   expt[c, p]   = exp(transitions[p, c] - colmax[c])
    nll_ref:   (1, B_TILE) f32 output (written at the last L block)
    scratch (carried across the L grid axis):
      alpha_ref (T, B_TILE) f32, score_ref (1, B_TILE) f32,
      last_ref / prev_ref (1, B_TILE) i32
    """
    l = pl.program_id(1)
    n_l = pl.num_programs(1)
    l_tile, T, B = em_ref.shape
    f32 = jnp.float32

    start_col = start_ref[...]                           # (T, 1)
    colmax = colmax_ref[...]                             # (T, 1)
    trans_t = trans_t_ref[...]                           # (T, T)
    expt = expt_ref[...]                                 # (T, T)
    row_iota = lax.broadcasted_iota(jnp.int32, (T, B), 0)

    @pl.when(l == 0)
    def _init():
        # step 0: score = start[tags0] + em0[tags0]; alpha = start + em0.
        tags0 = jnp.maximum(tags_ref[pl.ds(0, 1), :], 0)   # (1, B)
        em0 = em_ref[0]                                    # (T, B)
        a0 = start_col + em0
        oh0 = (row_iota == tags0).astype(f32)
        alpha_ref[...] = a0
        score_ref[...] = jnp.sum(oh0 * a0, axis=0, keepdims=True)
        last_ref[...] = tags0
        prev_ref[...] = tags0

    def step(j):
        em_j = em_ref[j]                                   # (T, B)
        mask_j = mask_ref[pl.ds(j, 1), :]                  # (1, B)
        cur = jnp.maximum(tags_ref[pl.ds(j, 1), :], 0)     # (1, B)
        live = mask_j > 0.0                                # (1, B)

        # --- numerator: gold-path transition + emission gather (per step) --
        oh_prev = (row_iota == prev_ref[...]).astype(f32)  # (P, B)
        oh_cur = (row_iota == cur).astype(f32)             # (C, B)
        # rows[c, b] = transitions[prev_b, c]   (tiny matmul on idle MXU)
        rows = jnp.dot(trans_t, oh_prev, preferred_element_type=f32)   # (C, B)
        gold = jnp.sum(oh_cur * (rows + em_j), axis=0, keepdims=True)  # (1, B)
        score_ref[...] = score_ref[...] + mask_j * gold

        # --- denominator: exp-space forward recursion (double max shift) ---
        alpha = alpha_ref[...]                             # (P, B)
        m = jnp.max(alpha, axis=0, keepdims=True)          # (1, B)
        pvec = jnp.exp(alpha - m)                          # (P, B), entries <= 1
        nxt = jnp.dot(expt, pvec, preferred_element_type=f32)          # (C, B) > 0
        new_alpha = jnp.log(nxt) + m + colmax + em_j       # (C, B)
        alpha_ref[...] = jnp.where(live, new_alpha, alpha)

        last_ref[...] = jnp.where(live, cur, last_ref[...])
        prev_ref[...] = cur

    # The first step of a non-leading L block consumes the scratch carried
    # over from the previous block; the leading block's step 0 is _init.
    @pl.when(l != 0)
    def _boundary():
        step(0)

    @pl.loop(1, l_tile)
    def _steps(j):
        step(j)

    @pl.when(l == n_l - 1)
    def _finalize():
        end_col = end_ref[...]                             # (T, 1)
        oh_last = (row_iota == last_ref[...]).astype(f32)  # (T, B)
        end_sc = jnp.sum(oh_last * end_col, axis=0, keepdims=True)     # (1, B)
        alpha = alpha_ref[...] + end_col                   # (T, B)
        m = jnp.max(alpha, axis=0, keepdims=True)          # (1, B)
        denom = jnp.log(jnp.sum(jnp.exp(alpha - m), axis=0,
                                keepdims=True)) + m        # (1, B)
        nll_ref[...] = denom - (score_ref[...] + end_sc)


def _compiler_params(l_tile, T, b_tile):
    # Double-buffered input blocks + scratch + output block.  The per-step
    # one-hot temporaries are only (T, B_TILE) and live in vregs.
    block_bytes = 4 * (2 * l_tile * T * b_tile        # emissions (x2 buffers)
                       + 2 * 2 * l_tile * b_tile      # tags + mask (x2 buffers)
                       + (T + 3) * b_tile             # scratch
                       + 2 * b_tile                   # output block
                       + 4 * T * T + 4 * T)           # parameter blocks
    sem = ("parallel", "arbitrary")
    if block_bytes <= 12 * 1024 * 1024:
        return pltpu.CompilerParams(dimension_semantics=sem)
    try:
        cap = pltpu.get_tpu_info().vmem_capacity_bytes
    except Exception:
        cap = 64 * 1024 * 1024   # conservative (v7x per-TC VMEM)
    limit = min(block_bytes + block_bytes // 2, cap - 8 * 1024 * 1024)
    return pltpu.CompilerParams(dimension_semantics=sem,
                                vmem_limit_bytes=int(limit))


def crf_forward(emissions, tags, mask, start, end, trans, reduction="mean"):
    """CRF NLL matching torchcrf-style CRF.forward with batch_first=False.

    emissions: (L, B, T) float, tags: (L, B) int, mask: (L, B) in {0, 1}.
    Assumes (like the PyTorch module) mask[0, :] == 1 and contiguous prefixes.
    """
    if reduction not in ("none", "sum", "mean", "token_mean"):
        raise ValueError(f"invalid reduction: {reduction}")
    L, B, T = emissions.shape

    b_tile = _B_TILE
    b_pad = _round_up(B, b_tile)
    l_tile = min(128, _round_up(L, 8))
    l_pad = _round_up(L, l_tile)

    # Batch on lanes; pad masked steps / batch columns with zeros (no-ops).
    em_tb = jnp.transpose(emissions.astype(jnp.float32), (0, 2, 1))   # (L, T, B)
    em_tb = jnp.pad(em_tb, ((0, l_pad - L), (0, 0), (0, b_pad - B)))
    tags_p = jnp.pad(tags.astype(jnp.int32), ((0, l_pad - L), (0, b_pad - B)))
    mask_p = jnp.pad(mask.astype(jnp.float32), ((0, l_pad - L), (0, b_pad - B)))

    start_col = start.reshape(T, 1).astype(jnp.float32)
    end_col = end.reshape(T, 1).astype(jnp.float32)
    trans_f = trans.astype(jnp.float32)
    trans_t = trans_f.T                                    # (C, P)
    colmax = jnp.max(trans_f, axis=0).reshape(T, 1)        # (C, 1)
    expt = jnp.exp(trans_t - colmax)                       # (C, P), entries <= 1

    grid = (b_pad // b_tile, l_pad // l_tile)

    nll = pl.pallas_call(
        _crf_kernel,
        out_shape=jax.ShapeDtypeStruct((1, b_pad), jnp.float32),
        grid_spec=pltpu.PrefetchScalarGridSpec(
            num_scalar_prefetch=0,
            grid=grid,
            in_specs=[
                pl.BlockSpec((l_tile, T, b_tile), lambda b, l: (l, 0, b)),
                pl.BlockSpec((l_tile, b_tile), lambda b, l: (l, b)),
                pl.BlockSpec((l_tile, b_tile), lambda b, l: (l, b)),
                pl.BlockSpec((T, 1), lambda b, l: (0, 0)),
                pl.BlockSpec((T, 1), lambda b, l: (0, 0)),
                pl.BlockSpec((T, T), lambda b, l: (0, 0)),
                pl.BlockSpec((T, T), lambda b, l: (0, 0)),
                pl.BlockSpec((T, 1), lambda b, l: (0, 0)),
            ],
            out_specs=pl.BlockSpec((1, b_tile), lambda b, l: (0, b)),
            scratch_shapes=[
                pltpu.VMEM((T, b_tile), jnp.float32),      # alpha
                pltpu.VMEM((1, b_tile), jnp.float32),      # gold-path score
                pltpu.VMEM((1, b_tile), jnp.int32),        # last valid tag
                pltpu.VMEM((1, b_tile), jnp.int32),        # previous-step tag
            ]),
        compiler_params=_compiler_params(l_tile, T, b_tile),
    )(em_tb, tags_p, mask_p, start_col, end_col, trans_t, expt, colmax)

    nll = nll[0, :B]
    if reduction == "none":
        return nll
    if reduction == "sum":
        return jnp.sum(nll)
    if reduction == "mean":
        return jnp.mean(nll)
    return jnp.sum(nll) / jnp.sum(mask.astype(jnp.float32))


# ------------------------- pure-JAX reference ------------------------------
def crf_nll_ref(emissions, tags, mask, start, end, trans):
    L, B, T = emissions.shape
    tags = jnp.maximum(tags, 0)
    maskf = mask.astype(emissions.dtype)
    ar = jnp.arange(B)
    score = start[tags[0]] + emissions[0, ar, tags[0]]
    for i in range(1, L):
        score += trans[tags[i - 1], tags[i]] * maskf[i]
        score += emissions[i, ar, tags[i]] * maskf[i]
    last_i = jnp.sum(mask.astype(jnp.int32), axis=0) - 1
    last_tags = tags[last_i, ar]
    score += end[last_tags]
    alpha = start + emissions[0]
    maskb = mask.astype(bool)
    for i in range(1, L):
        nxt = alpha[:, :, None] + trans + emissions[i][:, None, :]
        nxt = jax.scipy.special.logsumexp(nxt, axis=1)
        alpha = jnp.where(maskb[i][:, None], nxt, alpha)
    alpha = alpha + end
    denom = jax.scipy.special.logsumexp(alpha, axis=1)
    return denom - score


if __name__ == "__main__":
    L, B, T = 8, 4, 16   # seq_len, batch, num_tags

    key = jax.random.PRNGKey(0)
    k_em, k_tag, k_s, k_e, k_tr = jax.random.split(key, 5)

    # deterministic parameter init: uniform(-0.1, 0.1) as in reset_parameters()
    start = jax.random.uniform(k_s, (T,), minval=-0.1, maxval=0.1)
    end = jax.random.uniform(k_e, (T,), minval=-0.1, maxval=0.1)
    trans = jax.random.uniform(k_tr, (T, T), minval=-0.1, maxval=0.1)

    emissions = jax.random.normal(k_em, (L, B, T), dtype=jnp.float32)
    tags = jax.random.randint(k_tag, (L, B), 0, T, dtype=jnp.int32)
    lengths = jnp.array([L, L - 2, L - 1, L - 3], dtype=jnp.int32)
    mask = (jnp.arange(L)[:, None] < lengths[None, :]).astype(jnp.float32)

    # module assumption (same as PyTorch CRF): first timestep is always valid.
    assert bool(jnp.all(mask[0] > 0))

    nll_none = jax.block_until_ready(
        crf_forward(emissions, tags, mask, start, end, trans, reduction="none"))
    loss_sum = jax.block_until_ready(
        crf_forward(emissions, tags, mask, start, end, trans, reduction="sum"))
    loss_mean = jax.block_until_ready(
        crf_forward(emissions, tags, mask, start, end, trans, reduction="mean"))
    loss_tok = jax.block_until_ready(
        crf_forward(emissions, tags, mask, start, end, trans,
                    reduction="token_mean"))

    nll_ref = crf_nll_ref(emissions, tags, mask, start, end, trans)
    assert jnp.allclose(nll_none, nll_ref, rtol=1e-4, atol=1e-4), (nll_none, nll_ref)
    assert jnp.allclose(loss_sum, jnp.sum(nll_ref), rtol=1e-4, atol=1e-4)
    assert jnp.allclose(loss_mean, jnp.mean(nll_ref), rtol=1e-4, atol=1e-4)
    assert jnp.allclose(loss_tok, jnp.sum(nll_ref) / jnp.sum(mask),
                        rtol=1e-4, atol=1e-4)

    print("KERNEL_OK")
</pallas_src>

<mosaic_0001>
module attributes {stable_mosaic.version = 11 : i64} {
  func.func @_crf_kernel(%arg0: i32, %arg1: i32, %arg2: memref<8x16x128xf32, #tpu.memory_space<vmem>>, %arg3: memref<8x128xi32, #tpu.memory_space<vmem>>, %arg4: memref<8x128xf32, #tpu.memory_space<vmem>>, %arg5: memref<16x1xf32, #tpu.memory_space<vmem>>, %arg6: memref<16x1xf32, #tpu.memory_space<vmem>>, %arg7: memref<16x16xf32, #tpu.memory_space<vmem>>, %arg8: memref<16x16xf32, #tpu.memory_space<vmem>>, %arg9: memref<16x1xf32, #tpu.memory_space<vmem>>, %arg10: memref<1x128xf32, #tpu.memory_space<vmem>>, %arg11: memref<16x128xf32, #tpu.memory_space<vmem>>, %arg12: memref<1x128xf32, #tpu.memory_space<vmem>>, %arg13: memref<1x128xi32, #tpu.memory_space<vmem>>, %arg14: memref<1x128xi32, #tpu.memory_space<vmem>>) attributes {dimension_semantics = [#tpu.dimension_semantics<parallel>, #tpu.dimension_semantics<arbitrary>], iteration_bounds = array<i64: 1, 1>, scalar_prefetch = 0 : i64, scratch_operands = 4 : i64, tpu.core_type = #tpu.core_type<tc>, window_params = [{transform_indices = @transform_0, window_bounds = array<i64: 8, 16, 128>}, {transform_indices = @transform_1, window_bounds = array<i64: 8, 128>}, {transform_indices = @transform_2, window_bounds = array<i64: 8, 128>}, {pipeline_mode = #tpu.pipeline_mode<synchronous>, transform_indices = @transform_3, window_bounds = array<i64: 16, 1>}, {pipeline_mode = #tpu.pipeline_mode<synchronous>, transform_indices = @transform_4, window_bounds = array<i64: 16, 1>}, {pipeline_mode = #tpu.pipeline_mode<synchronous>, transform_indices = @transform_5, window_bounds = array<i64: 16, 16>}, {pipeline_mode = #tpu.pipeline_mode<synchronous>, transform_indices = @transform_6, window_bounds = array<i64: 16, 16>}, {pipeline_mode = #tpu.pipeline_mode<synchronous>, transform_indices = @transform_7, window_bounds = array<i64: 16, 1>}, {transform_indices = @transform_8, window_bounds = array<i64: 1, 128>}]} {
    %c0 = arith.constant 0 : index
    %c0_0 = arith.constant 0 : index
    %0 = vector.load %arg5[%c0, %c0_0] : memref<16x1xf32, #tpu.memory_space<vmem>>, vector<16x1xf32>
    %c0_1 = arith.constant 0 : index
    %c0_2 = arith.constant 0 : index
    %1 = vector.load %arg9[%c0_1, %c0_2] : memref<16x1xf32, #tpu.memory_space<vmem>>, vector<16x1xf32>
    %c0_3 = arith.constant 0 : index
    %c0_4 = arith.constant 0 : index
    %2 = vector.load %arg7[%c0_3, %c0_4] : memref<16x16xf32, #tpu.memory_space<vmem>>, vector<16x16xf32>
    %c0_5 = arith.constant 0 : index
    %c0_6 = arith.constant 0 : index
    %3 = vector.load %arg8[%c0_5, %c0_6] : memref<16x16xf32, #tpu.memory_space<vmem>>, vector<16x16xf32>
    %4 = tpu.iota {dimensions = array<i32: 0>} : vector<16x128xi32>
    %c0_i32 = arith.constant 0 : i32
    %5 = arith.cmpi eq, %arg1, %c0_i32 : i32
    %6 = arith.extui %5 : i1 to i32
    %c0_i32_7 = arith.constant 0 : i32
    %7 = arith.cmpi ne, %6, %c0_i32_7 : i32
    scf.if %7 {
      %c0_14 = arith.constant 0 : index
      %c0_15 = arith.constant 0 : index
      %15 = vector.load %arg3[%c0_14, %c0_15] : memref<8x128xi32, #tpu.memory_space<vmem>>, vector<1x128xi32>
      %c0_i32_16 = arith.constant 0 : i32
      %16 = vector.broadcast %c0_i32_16 : i32 to vector<1x128xi32>
      %17 = arith.maxsi %15, %16 : vector<1x128xi32>
      %c0_17 = arith.constant 0 : index
      %c0_18 = arith.constant 0 : index
      %c0_19 = arith.constant 0 : index
      %18 = vector.load %arg2[%c0_17, %c0_18, %c0_19] : memref<8x16x128xf32, #tpu.memory_space<vmem>>, vector<1x16x128xf32>
      %19 = vector.shape_cast %18 : vector<1x16x128xf32> to vector<16x128xf32>
      %20 = vector.broadcast %0 : vector<16x1xf32> to vector<16x128xf32>
      %21 = arith.addf %20, %19 : vector<16x128xf32>
      %22 = vector.broadcast %17 : vector<1x128xi32> to vector<16x128xi32>
      %23 = arith.cmpi eq, %4, %22 : vector<16x128xi32>
      %24 = arith.extui %23 : vector<16x128xi1> to vector<16x128xi32>
      %25 = arith.sitofp %24 : vector<16x128xi32> to vector<16x128xf32>
      %c0_20 = arith.constant 0 : index
      %c0_21 = arith.constant 0 : index
      %26 = vector.load %arg11[%c0_20, %c0_21] : memref<16x128xf32, #tpu.memory_space<vmem>>, vector<16x128xf32>
      tpu.vector_store %arg11[%c0_20, %c0_21], %21 {strides = array<i32>} : memref<16x128xf32, #tpu.memory_space<vmem>>, vector<16x128xf32>,
      %27 = arith.mulf %25, %21 : vector<16x128xf32>
      %cst = arith.constant dense<0.000000e+00> : vector<128xf32>
      %28 = vector.multi_reduction <add>, %27, %cst [0] : vector<16x128xf32> to vector<128xf32>
      %29 = vector.shape_cast %28 : vector<128xf32> to vector<1x128xf32>
      %c0_22 = arith.constant 0 : index
      %c0_23 = arith.constant 0 : index
      %30 = vector.load %arg12[%c0_22, %c0_23] : memref<1x128xf32, #tpu.memory_space<vmem>>, vector<1x128xf32>
      tpu.vector_store %arg12[%c0_22, %c0_23], %29 {strides = array<i32>} : memref<1x128xf32, #tpu.memory_space<vmem>>, vector<1x128xf32>,
      %c0_24 = arith.constant 0 : index
      %c0_25 = arith.constant 0 : index
      %31 = vector.load %arg13[%c0_24, %c0_25] : memref<1x128xi32, #tpu.memory_space<vmem>>, vector<1x128xi32>
      tpu.vector_store %arg13[%c0_24, %c0_25], %17 {strides = array<i32>} : memref<1x128xi32, #tpu.memory_space<vmem>>, vector<1x128xi32>,
      %c0_26 = arith.constant 0 : index
      %c0_27 = arith.constant 0 : index
      %32 = vector.load %arg14[%c0_26, %c0_27] : memref<1x128xi32, #tpu.memory_space<vmem>>, vector<1x128xi32>
      tpu.vector_store %arg14[%c0_26, %c0_27], %17 {strides = array<i32>} : memref<1x128xi32, #tpu.memory_space<vmem>>, vector<1x128xi32>,
    } else {
    }
    %c0_i32_8 = arith.constant 0 : i32
    %8 = arith.cmpi ne, %arg1, %c0_i32_8 : i32
    %9 = arith.extui %8 : i1 to i32
    %c0_i32_9 = arith.constant 0 : i32
    %10 = arith.cmpi ne, %9, %c0_i32_9 : i32
    scf.if %10 {
      %c0_14 = arith.constant 0 : index
      %c0_15 = arith.constant 0 : index
      %c0_16 = arith.constant 0 : index
      %15 = vector.load %arg2[%c0_14, %c0_15, %c0_16] : memref<8x16x128xf32, #tpu.memory_space<vmem>>, vector<1x16x128xf32>
      %16 = vector.shape_cast %15 : vector<1x16x128xf32> to vector<16x128xf32>
      %c0_17 = arith.constant 0 : index
      %c0_18 = arith.constant 0 : index
      %17 = vector.load %arg4[%c0_17, %c0_18] : memref<8x128xf32, #tpu.memory_space<vmem>>, vector<1x128xf32>
      %c0_19 = arith.constant 0 : index
      %c0_20 = arith.constant 0 : index
      %18 = vector.load %arg3[%c0_19, %c0_20] : memref<8x128xi32, #tpu.memory_space<vmem>>, vector<1x128xi32>
      %c0_i32_21 = arith.constant 0 : i32
      %19 = vector.broadcast %c0_i32_21 : i32 to vector<1x128xi32>
      %20 = arith.maxsi %18, %19 : vector<1x128xi32>
      %cst = arith.constant 0.000000e+00 : f32
      %21 = vector.broadcast %cst : f32 to vector<1x128xf32>
      %22 = arith.cmpf ogt, %17, %21 : vector<1x128xf32>
      %c0_22 = arith.constant 0 : index
      %c0_23 = arith.constant 0 : index
      %23 = vector.load %arg14[%c0_22, %c0_23] : memref<1x128xi32, #tpu.memory_space<vmem>>, vector<1x128xi32>
      %24 = vector.broadcast %23 : vector<1x128xi32> to vector<16x128xi32>
      %25 = arith.cmpi eq, %4, %24 : vector<16x128xi32>
      %26 = arith.extui %25 : vector<16x128xi1> to vector<16x128xi32>
      %27 = arith.sitofp %26 : vector<16x128xi32> to vector<16x128xf32>
      %28 = vector.broadcast %20 : vector<1x128xi32> to vector<16x128xi32>
      %29 = arith.cmpi eq, %4, %28 : vector<16x128xi32>
      %30 = arith.extui %29 : vector<16x128xi1> to vector<16x128xi32>
      %31 = arith.sitofp %30 : vector<16x128xi32> to vector<16x128xf32>
      %cst_24 = arith.constant dense<0.000000e+00> : vector<16x128xf32>
      %32 = tpu.matmul %2, %27, %cst_24 {dimension_numbers = #tpu.dot_dimension_numbers<[1], [0], [0], [1], [0, 0, 1, 1], [], []>} : vector<16x16xf32>, vector<16x128xf32>, vector<16x128xf32> -> vector<16x128xf32>
      %33 = arith.addf %32, %16 : vector<16x128xf32>
      %34 = arith.mulf %31, %33 : vector<16x128xf32>
      %cst_25 = arith.constant dense<0.000000e+00> : vector<128xf32>
      %35 = vector.multi_reduction <add>, %34, %cst_25 [0] : vector<16x128xf32> to vector<128xf32>
      %36 = vector.shape_cast %35 : vector<128xf32> to vector<1x128xf32>
      %c0_26 = arith.constant 0 : index
      %c0_27 = arith.constant 0 : index
      %37 = vector.load %arg12[%c0_26, %c0_27] : memref<1x128xf32, #tpu.memory_space<vmem>>, vector<1x128xf32>
      %38 = arith.mulf %17, %36 : vector<1x128xf32>
      %39 = arith.addf %37, %38 : vector<1x128xf32>
      %c0_28 = arith.constant 0 : index
      %c0_29 = arith.constant 0 : index
      %40 = vector.load %arg12[%c0_28, %c0_29] : memref<1x128xf32, #tpu.memory_space<vmem>>, vector<1x128xf32>
      tpu.vector_store %arg12[%c0_28, %c0_29], %39 {strides = array<i32>} : memref<1x128xf32, #tpu.memory_space<vmem>>, vector<1x128xf32>,
      %c0_30 = arith.constant 0 : index
      %c0_31 = arith.constant 0 : index
      %41 = vector.load %arg11[%c0_30, %c0_31] : memref<16x128xf32, #tpu.memory_space<vmem>>, vector<16x128xf32>
      %cst_32 = arith.constant dense<0xFF800000> : vector<128xf32>
      %42 = vector.multi_reduction <maximumf>, %41, %cst_32 [0] : vector<16x128xf32> to vector<128xf32>
      %43 = vector.shape_cast %42 : vector<128xf32> to vector<1x128xf32>
      %44 = vector.broadcast %43 : vector<1x128xf32> to vector<16x128xf32>
      %45 = arith.subf %41, %44 : vector<16x128xf32>
      %46 = math.exp %45 : vector<16x128xf32>
      %cst_33 = arith.constant dense<0.000000e+00> : vector<16x128xf32>
      %47 = tpu.matmul %3, %46, %cst_33 {dimension_numbers = #tpu.dot_dimension_numbers<[1], [0], [0], [1], [0, 0, 1, 1], [], []>} : vector<16x16xf32>, vector<16x128xf32>, vector<16x128xf32> -> vector<16x128xf32>
      %48 = math.log %47 : vector<16x128xf32>
      %49 = vector.broadcast %43 : vector<1x128xf32> to vector<16x128xf32>
      %50 = arith.addf %48, %49 : vector<16x128xf32>
      %51 = vector.broadcast %1 : vector<16x1xf32> to vector<16x128xf32>
      %52 = arith.addf %50, %51 : vector<16x128xf32>
      %53 = arith.addf %52, %16 : vector<16x128xf32>
      %54 = vector.shape_cast %22 : vector<1x128xi1> to vector<1x128xi1>
      %55 = vector.broadcast %54 : vector<1x128xi1> to vector<16x128xi1>
      %56 = arith.select %55, %53, %41 : vector<16x128xi1>, vector<16x128xf32>
      %c0_34 = arith.constant 0 : index
      %c0_35 = arith.constant 0 : index
      %57 = vector.load %arg11[%c0_34, %c0_35] : memref<16x128xf32, #tpu.memory_space<vmem>>, vector<16x128xf32>
      tpu.vector_store %arg11[%c0_34, %c0_35], %56 {strides = array<i32>} : memref<16x128xf32, #tpu.memory_space<vmem>>, vector<16x128xf32>,
      %c0_36 = arith.constant 0 : index
      %c0_37 = arith.constant 0 : index
      %58 = vector.load %arg13[%c0_36, %c0_37] : memref<1x128xi32, #tpu.memory_space<vmem>>, vector<1x128xi32>
      %59 = arith.select %22, %20, %58 : vector<1x128xi1>, vector<1x128xi32>
      %c0_38 = arith.constant 0 : index
      %c0_39 = arith.constant 0 : index
      %60 = vector.load %arg13[%c0_38, %c0_39] : memref<1x128xi32, #tpu.memory_space<vmem>>, vector<1x128xi32>
      tpu.vector_store %arg13[%c0_38, %c0_39], %59 {strides = array<i32>} : memref<1x128xi32, #tpu.memory_space<vmem>>, vector<1x128xi32>,
      %c0_40 = arith.constant 0 : index
      %c0_41 = arith.constant 0 : index
      %61 = vector.load %arg14[%c0_40, %c0_41] : memref<1x128xi32, #tpu.memory_space<vmem>>, vector<1x128xi32>
      tpu.vector_store %arg14[%c0_40, %c0_41], %20 {strides = array<i32>} : memref<1x128xi32, #tpu.memory_space<vmem>>, vector<1x128xi32>,
    } else {
    }
    %c0_i32_10 = arith.constant 0 : i32
    %c7_i32 = arith.constant 7 : i32
    %11 = arith.addi %c0_i32_10, %c7_i32 : i32
    %c1_i32 = arith.constant 1 : i32
    scf.for %arg15 = %c0_i32_10 to %11 step %c1_i32  : i32 {
      %c1_i32_14 = arith.constant 1 : i32
      %15 = arith.muli %arg15, %c1_i32_14 : i32
      %c1_i32_15 = arith.constant 1 : i32
      %16 = arith.addi %c1_i32_15, %15 : i32
      %17 = arith.index_cast %16 : i32 to index
      %c0_16 = arith.constant 0 : index
      %c0_17 = arith.constant 0 : index
      %18 = vector.load %arg2[%17, %c0_16, %c0_17] : memref<8x16x128xf32, #tpu.memory_space<vmem>>, vector<1x16x128xf32>
      %19 = vector.shape_cast %18 : vector<1x16x128xf32> to vector<16x128xf32>
      %20 = arith.index_cast %16 : i32 to index
      %c0_18 = arith.constant 0 : index
      %21 = vector.load %arg4[%20, %c0_18] : memref<8x128xf32, #tpu.memory_space<vmem>>, vector<1x128xf32>
      %22 = arith.index_cast %16 : i32 to index
      %c0_19 = arith.constant 0 : index
      %23 = vector.load %arg3[%22, %c0_19] : memref<8x128xi32, #tpu.memory_space<vmem>>, vector<1x128xi32>
      %c0_i32_20 = arith.constant 0 : i32
      %24 = vector.broadcast %c0_i32_20 : i32 to vector<1x128xi32>
      %25 = arith.maxsi %23, %24 : vector<1x128xi32>
      %cst = arith.constant 0.000000e+00 : f32
      %26 = vector.broadcast %cst : f32 to vector<1x128xf32>
      %27 = arith.cmpf ogt, %21, %26 : vector<1x128xf32>
      %c0_21 = arith.constant 0 : index
      %c0_22 = arith.constant 0 : index
      %28 = vector.load %arg14[%c0_21, %c0_22] : memref<1x128xi32, #tpu.memory_space<vmem>>, vector<1x128xi32>
      %29 = vector.broadcast %28 : vector<1x128xi32> to vector<16x128xi32>
      %30 = arith.cmpi eq, %4, %29 : vector<16x128xi32>
      %31 = arith.extui %30 : vector<16x128xi1> to vector<16x128xi32>
      %32 = arith.sitofp %31 : vector<16x128xi32> to vector<16x128xf32>
      %33 = vector.broadcast %25 : vector<1x128xi32> to vector<16x128xi32>
      %34 = arith.cmpi eq, %4, %33 : vector<16x128xi32>
      %35 = arith.extui %34 : vector<16x128xi1> to vector<16x128xi32>
      %36 = arith.sitofp %35 : vector<16x128xi32> to vector<16x128xf32>
      %cst_23 = arith.constant dense<0.000000e+00> : vector<16x128xf32>
      %37 = tpu.matmul %2, %32, %cst_23 {dimension_numbers = #tpu.dot_dimension_numbers<[1], [0], [0], [1], [0, 0, 1, 1], [], []>} : vector<16x16xf32>, vector<16x128xf32>, vector<16x128xf32> -> vector<16x128xf32>
      %38 = arith.addf %37, %19 : vector<16x128xf32>
      %39 = arith.mulf %36, %38 : vector<16x128xf32>
      %cst_24 = arith.constant dense<0.000000e+00> : vector<128xf32>
      %40 = vector.multi_reduction <add>, %39, %cst_24 [0] : vector<16x128xf32> to vector<128xf32>
      %41 = vector.shape_cast %40 : vector<128xf32> to vector<1x128xf32>
      %c0_25 = arith.constant 0 : index
      %c0_26 = arith.constant 0 : index
      %42 = vector.load %arg12[%c0_25, %c0_26] : memref<1x128xf32, #tpu.memory_space<vmem>>, vector<1x128xf32>
      %43 = arith.mulf %21, %41 : vector<1x128xf32>
      %44 = arith.addf %42, %43 : vector<1x128xf32>
      %c0_27 = arith.constant 0 : index
      %c0_28 = arith.constant 0 : index
      %45 = vector.load %arg12[%c0_27, %c0_28] : memref<1x128xf32, #tpu.memory_space<vmem>>, vector<1x128xf32>
      tpu.vector_store %arg12[%c0_27, %c0_28], %44 {strides = array<i32>} : memref<1x128xf32, #tpu.memory_space<vmem>>, vector<1x128xf32>,
      %c0_29 = arith.constant 0 : index
      %c0_30 = arith.constant 0 : index
      %46 = vector.load %arg11[%c0_29, %c0_30] : memref<16x128xf32, #tpu.memory_space<vmem>>, vector<16x128xf32>
      %cst_31 = arith.constant dense<0xFF800000> : vector<128xf32>
      %47 = vector.multi_reduction <maximumf>, %46, %cst_31 [0] : vector<16x128xf32> to vector<128xf32>
      %48 = vector.shape_cast %47 : vector<128xf32> to vector<1x128xf32>
      %49 = vector.broadcast %48 : vector<1x128xf32> to vector<16x128xf32>
      %50 = arith.subf %46, %49 : vector<16x128xf32>
      %51 = math.exp %50 : vector<16x128xf32>
      %cst_32 = arith.constant dense<0.000000e+00> : vector<16x128xf32>
      %52 = tpu.matmul %3, %51, %cst_32 {dimension_numbers = #tpu.dot_dimension_numbers<[1], [0], [0], [1], [0, 0, 1, 1], [], []>} : vector<16x16xf32>, vector<16x128xf32>, vector<16x128xf32> -> vector<16x128xf32>
      %53 = math.log %52 : vector<16x128xf32>
      %54 = vector.broadcast %48 : vector<1x128xf32> to vector<16x128xf32>
      %55 = arith.addf %53, %54 : vector<16x128xf32>
      %56 = vector.broadcast %1 : vector<16x1xf32> to vector<16x128xf32>
      %57 = arith.addf %55, %56 : vector<16x128xf32>
      %58 = arith.addf %57, %19 : vector<16x128xf32>
      %59 = vector.shape_cast %27 : vector<1x128xi1> to vector<1x128xi1>
      %60 = vector.broadcast %59 : vector<1x128xi1> to vector<16x128xi1>
      %61 = arith.select %60, %58, %46 : vector<16x128xi1>, vector<16x128xf32>
      %c0_33 = arith.constant 0 : index
      %c0_34 = arith.constant 0 : index
      %62 = vector.load %arg11[%c0_33, %c0_34] : memref<16x128xf32, #tpu.memory_space<vmem>>, vector<16x128xf32>
      tpu.vector_store %arg11[%c0_33, %c0_34], %61 {strides = array<i32>} : memref<16x128xf32, #tpu.memory_space<vmem>>, vector<16x128xf32>,
      %c0_35 = arith.constant 0 : index
      %c0_36 = arith.constant 0 : index
      %63 = vector.load %arg13[%c0_35, %c0_36] : memref<1x128xi32, #tpu.memory_space<vmem>>, vector<1x128xi32>
      %64 = arith.select %27, %25, %63 : vector<1x128xi1>, vector<1x128xi32>
      %c0_37 = arith.constant 0 : index
      %c0_38 = arith.constant 0 : index
      %65 = vector.load %arg13[%c0_37, %c0_38] : memref<1x128xi32, #tpu.memory_space<vmem>>, vector<1x128xi32>
      tpu.vector_store %arg13[%c0_37, %c0_38], %64 {strides = array<i32>} : memref<1x128xi32, #tpu.memory_space<vmem>>, vector<1x128xi32>,
      %c0_39 = arith.constant 0 : index
      %c0_40 = arith.constant 0 : index
      %66 = vector.load %arg14[%c0_39, %c0_40] : memref<1x128xi32, #tpu.memory_space<vmem>>, vector<1x128xi32>
      tpu.vector_store %arg14[%c0_39, %c0_40], %25 {strides = array<i32>} : memref<1x128xi32, #tpu.memory_space<vmem>>, vector<1x128xi32>,
    }
    %c7_i32_11 = arith.constant 7 : i32
    %c0_i32_12 = arith.constant 0 : i32
    %12 = arith.cmpi eq, %arg1, %c0_i32_12 : i32
    %13 = arith.extui %12 : i1 to i32
    %c0_i32_13 = arith.constant 0 : i32
    %14 = arith.cmpi ne, %13, %c0_i32_13 : i32
    scf.if %14 {
      %c0_14 = arith.constant 0 : index
      %c0_15 = arith.constant 0 : index
      %15 = vector.load %arg6[%c0_14, %c0_15] : memref<16x1xf32, #tpu.memory_space<vmem>>, vector<16x1xf32>
      %c0_16 = arith.constant 0 : index
      %c0_17 = arith.constant 0 : index
      %16 = vector.load %arg13[%c0_16, %c0_17] : memref<1x128xi32, #tpu.memory_space<vmem>>, vector<1x128xi32>
      %17 = vector.broadcast %16 : vector<1x128xi32> to vector<16x128xi32>
      %18 = arith.cmpi eq, %4, %17 : vector<16x128xi32>
      %19 = arith.extui %18 : vector<16x128xi1> to vector<16x128xi32>
      %20 = arith.sitofp %19 : vector<16x128xi32> to vector<16x128xf32>
      %21 = vector.broadcast %15 : vector<16x1xf32> to vector<16x128xf32>
      %22 = arith.mulf %20, %21 : vector<16x128xf32>
      %cst = arith.constant dense<0.000000e+00> : vector<128xf32>
      %23 = vector.multi_reduction <add>, %22, %cst [0] : vector<16x128xf32> to vector<128xf32>
      %24 = vector.shape_cast %23 : vector<128xf32> to vector<1x128xf32>
      %c0_18 = arith.constant 0 : index
      %c0_19 = arith.constant 0 : index
      %25 = vector.load %arg11[%c0_18, %c0_19] : memref<16x128xf32, #tpu.memory_space<vmem>>, vector<16x128xf32>
      %26 = vector.broadcast %15 : vector<16x1xf32> to vector<16x128xf32>
      %27 = arith.addf %25, %26 : vector<16x128xf32>
      %cst_20 = arith.constant dense<0xFF800000> : vector<128xf32>
      %28 = vector.multi_reduction <maximumf>, %27, %cst_20 [0] : vector<16x128xf32> to vector<128xf32>
      %29 = vector.shape_cast %28 : vector<128xf32> to vector<1x128xf32>
      %30 = vector.broadcast %29 : vector<1x128xf32> to vector<16x128xf32>
      %31 = arith.subf %27, %30 : vector<16x128xf32>
      %32 = math.exp %31 : vector<16x128xf32>
      %cst_21 = arith.constant dense<0.000000e+00> : vector<128xf32>
      %33 = vector.multi_reduction <add>, %32, %cst_21 [0] : vector<16x128xf32> to vector<128xf32>
      %34 = vector.shape_cast %33 : vector<128xf32> to vector<1x128xf32>
      %35 = math.log %34 : vector<1x128xf32>
      %36 = arith.addf %35, %29 : vector<1x128xf32>
      %c0_22 = arith.constant 0 : index
      %c0_23 = arith.constant 0 : index
      %37 = vector.load %arg12[%c0_22, %c0_23] : memref<1x128xf32, #tpu.memory_space<vmem>>, vector<1x128xf32>
      %38 = arith.addf %37, %24 : vector<1x128xf32>
      %39 = arith.subf %36, %38 : vector<1x128xf32>
      %c0_24 = arith.constant 0 : index
      %c0_25 = arith.constant 0 : index
      %40 = vector.load %arg10[%c0_24, %c0_25] : memref<1x128xf32, #tpu.memory_space<vmem>>, vector<1x128xf32>
      tpu.vector_store %arg10[%c0_24, %c0_25], %39 {strides = array<i32>} : memref<1x128xf32, #tpu.memory_space<vmem>>, vector<1x128xf32>,
    } else {
    }
    return
  }
  func.func @transform_0(%arg0: i32, %arg1: i32) -> (i32, i32, i32) {
    %c0_i32 = arith.constant 0 : i32
    %c0_i32_0 = arith.constant 0 : i32
    return %arg1, %c0_i32, %arg0 : i32, i32, i32
  }
  func.func @transform_1(%arg0: i32, %arg1: i32) -> (i32, i32) {
    %c0_i32 = arith.constant 0 : i32
    return %arg1, %arg0 : i32, i32
  }
  func.func @transform_2(%arg0: i32, %arg1: i32) -> (i32, i32) {
    %c0_i32 = arith.constant 0 : i32
    return %arg1, %arg0 : i32, i32
  }
  func.func @transform_3(%arg0: i32, %arg1: i32) -> (i32, i32) {
    %c0_i32 = arith.constant 0 : i32
    %c0_i32_0 = arith.constant 0 : i32
    %c0_i32_1 = arith.constant 0 : i32
    return %c0_i32, %c0_i32_0 : i32, i32
  }
  func.func @transform_4(%arg0: i32, %arg1: i32) -> (i32, i32) {
    %c0_i32 = arith.constant 0 : i32
    %c0_i32_0 = arith.constant 0 : i32
    %c0_i32_1 = arith.constant 0 : i32
    return %c0_i32, %c0_i32_0 : i32, i32
  }
  func.func @transform_5(%arg0: i32, %arg1: i32) -> (i32, i32) {
    %c0_i32 = arith.constant 0 : i32
    %c0_i32_0 = arith.constant 0 : i32
    %c0_i32_1 = arith.constant 0 : i32
    return %c0_i32, %c0_i32_0 : i32, i32
  }
  func.func @transform_6(%arg0: i32, %arg1: i32) -> (i32, i32) {
    %c0_i32 = arith.constant 0 : i32
    %c0_i32_0 = arith.constant 0 : i32
    %c0_i32_1 = arith.constant 0 : i32
    return %c0_i32, %c0_i32_0 : i32, i32
  }
  func.func @transform_7(%arg0: i32, %arg1: i32) -> (i32, i32) {
    %c0_i32 = arith.constant 0 : i32
    %c0_i32_0 = arith.constant 0 : i32
    %c0_i32_1 = arith.constant 0 : i32
    return %c0_i32, %c0_i32_0 : i32, i32
  }
  func.func @transform_8(%arg0: i32, %arg1: i32) -> (i32, i32) {
    %c0_i32 = arith.constant 0 : i32
    %c0_i32_0 = arith.constant 0 : i32
    return %c0_i32, %arg0 : i32, i32
  }
}

</mosaic_0001>

<bundles_post_ra>
// kernel: tpu_custom_call.1
= control target key start
LH: loop header
LB: loop body
LE: loop exit
PB: predicated region body
PF: predicated region fallthrough
CT: control target
= control target key end

     0   :  { %13 = vsyncpa [#allocation7], 0  ;;  %s1054_s0 = inlined_call_operand.hbm [shape: f32[8,16,128], index: 0, kind: input, shape index: {}]   ;;  %s1055_s1 = inlined_call_operand.vmem [shape: s32[8,128], index: 1, kind: input, shape index: {}]   ;;  %s1056_s2 = inlined_call_operand.vmem [shape: f32[8,128], index: 2, kind: input, shape index: {}]   ;;  %s1057_s3 = inlined_call_operand.vmem [shape: f32[16,1], index: 3, kind: input, shape index: {}]   ;;  %s1058_s4 = inlined_call_operand.vmem [shape: f32[16,1], index: 4, kind: input, shape index: {}]   ;;  %s1059_s5 = inlined_call_operand.vmem [shape: f32[16,16], index: 5, kind: input, shape index: {}]   ;;  %s1060_s6 = inlined_call_operand.vmem [shape: f32[16,16], index: 6, kind: input, shape index: {}]   ;;  %s1061_s7 = inlined_call_operand.vmem [shape: f32[16,1], index: 7, kind: input, shape index: {}]   ;;  %s1062_s8 = inlined_call_operand.hbm [shape: f32[1,128], index: 8, kind: output, shape index: {}]  }
   0x1   :  { %14 = vsyncpa [#allocation8], 0  ;;  %s866_s27 = smov [#allocation6]   ;;  %s810_s9 = scalar_lea.hbm %s1054_s0, 2048 }
   0x2   :  { %s20_s28 = sshll.u32 %s866_s27, 4  ;;  %p811_p0 = scmp.ne.s32.totalorder %s1054_s0, %s810_s9  ;;  %s21_s28 = int_to_ptr.vmem [resolvable:$true] %s20_s28 }
   0x3   :  { %p814_p1 = scmp.lt.u32.totalorder %s810_s9, %s1054_s0 }
   0x5   :  { %p816_p2 = pnand %p814_p1, %p811_p0 }
   0x7   :  { %819 = shalt.err (!%p816_p2)
}
   0x8   :  { %s820_s14 = scalar_lea.vmem %s21_s28, 2048  ;;  %p825_p4 = scmp.lt.s32.totalorder %s21_s28, %s21_s28 }
   0x9   :  { %p821_p3 = scmp.ne.s32.totalorder %s21_s28, %s820_s14  ;;  %p826_p5 = scmp.lt.s32.totalorder %s820_s14, %s820_s14 }
   0xb   :  { %p827_p6 = por %p826_p5, %p825_p4 }
   0xd   :  { %p828_p7 = pnand %p827_p6, %p821_p3 }
   0xf   :  { %831 = shalt.err (!%p828_p7)
}
  0x10   :  { %s867_s15 = smov 128   ;;  %s868_s16 = smov 8  }
  0x11   :  { %26 = dma.hbm_to_vmem [thread:$0]  %s1054_s0, 2048, %s21_s28, [#allocation7], %s867_s15, %s867_s15, %s868_s16  }
  0x12   :  { %858 = dma.done.wait [#allocation7], 2048  }
  0x13   :  { %859 = vsyncadd [#allocation7], 4294965248  ;;  %v869_v0 = vmov 0   ;;  %v936_v1 = vld [vmem:[%s1061_s7] sm:$0xff]  ;;  %v941_v2 = vld [vmem:[%s1061_s7 + $0x8] sm:$0xff]  ;;  %v52_v11 = vlaneseq  ;;  %v870_v20 = vmov 0.0  }
  0x14   :  { %793 = vset.pattern.permute.xlu0 %v869_v0  ;;  %v946_v3 = vld [vmem:[%s1059_s5] sm:$0xff]  ;;  %v951_v4 = vld [vmem:[%s1059_s5 + $0x8] sm:$0xff]  ;;  %v62_v16 = vld [vmem:[#allocation6] sm:$0xff] }
  0x15   :  { %v956_v5 = vld [vmem:[%s1060_s6] sm:$0xff]  ;;  %v961_v6 = vld [vmem:[%s1060_s6 + $0x8] sm:$0xff]  ;;  %v972_v12 = vshrl.u32 %v52_v11, 7 }
  0x16   :  { %v44_v7 = vld [vmem:[%s1057_s3] sm:$0xff]  ;;  %v45_v9 = vld [vmem:[%s1057_s3 + $0x8] sm:$0xff]  ;;  %s985_s3 = smov 0  }
  0x17   :  { %v59_v8 = vld [vmem:[%s1055_s1] sm:$0x1]  ;;  %66 = vperm.xlu0 %793, %v44_v7   ;;  %v975_v13 = vsub.s32 0, %v972_v12  ;;  %v979_v15 = vadd.s32 8, %v972_v12 }
  0x18   :  { %vm60_vm0 = vcmp.gt.s32.totalorder %v59_v8, 0  ;;  %v63_v19 = vld [vmem:[#allocation6 + $0x8] sm:$0xff] }
  0x19   :  { %v61_v10 = vsel %vm60_vm0, %v59_v8, 0 }
  0x1a   :  { %98 = vst [vmem:[#allocation4] sm:$0x1] %v61_v10  ;;  %99 = vst [vmem:[#allocation5] sm:$0x1] %v61_v10  ;;  %v79_v14 = vrot.slane %v61_v10, %v975_v13 }
  0x1b   :  { %71 = vperm.xlu0 %793, %v45_v9  }
  0x1c   :  { %vm80_vm1 = vcmp.eq.s32.totalorder %v972_v12, %v79_v14  ;;  %vm81_vm2 = vcmp.eq.s32.totalorder %v979_v15, %v79_v14 }
  0x1d   :  { %v714_v21 = vsel %vm80_vm1, 1.0, %v870_v20  ;;  %v715_v22 = vsel %vm81_vm2, 1.0, %v870_v20 }
  0x96   :  { %v67_v17 = vpop.permute.xlu0 %66 }
  0x97   :  { %v74_v18 = vadd.f32 %v67_v17, %v62_v16 }
  0x99   :  { %86 = vst [vmem:[#allocation2] sm:$0xff] %v74_v18  ;;  %v88_v25 = vmul.f32 %v714_v21, %v74_v18 }
  0x9a   :  { %v72_v23 = vpop.permute.xlu0 %71 }
  0x9b   :  { %v75_v24 = vadd.f32 %v72_v23, %v63_v19 }
  0x9d   :  { %87 = vst [vmem:[#allocation2 + $0x8] sm:$0xff] %v75_v24  ;;  %v89_v26 = vmul.f32 %v715_v22, %v75_v24 }
  0x9f   :  { %v90_v27 = vadd.f32 %v89_v26, %v88_v25 }
  0xa1   :  { %v91_v28 = vrot.slane %v90_v27, 4 }
  0xa3   :  { %v92_v29 = vadd.f32 %v91_v28, %v90_v27 }
  0xa5   :  { %v93_v30 = vrot.slane %v92_v29, 2 }
  0xa7   :  { %v94_v31 = vadd.f32 %v93_v30, %v92_v29 }
  0xa9   :  { %v95_v32 = vrot.slane %v94_v31, 1 }
  0xab   :  { %v96_v33 = vadd.f32 %v95_v32, %v94_v31 }
  0xad   :  { %97 = vst [vmem:[#allocation3] sm:$0x1] %v96_v33 }
  0xae LB: > { %v732_v34 = vld [vmem:[#allocation5] ss:$0 sm:$0xff]  ;;  %vm396_vm3 = vcmask 130048   ;;  %v990_v35 = vld [vmem:[#allocation2] sm:$0xff]  ;;  %v996_v36 = vld [vmem:[#allocation2 + $0x8] sm:$0xff]  ;;  %v871_v38 = vmov 0   ;;  %s705_s13 = scalar_lea.vmem %s1056_s2, %s864_s3  ;;  %s707_s16 = scalar_lea.vmem %s1055_s1, %s864_s3  ;;  %s864_s3 = sphi %s985_s3, %s362_s3  }
  0xaf   : > { %vm380_vm4 = vcmp.eq.s32.totalorder %v972_v12, %v732_v34  ;;  %vm381_vm5 = vcmp.eq.s32.totalorder %v979_v15, %v732_v34  ;;  %758 = vmatprep.mubr.msk.f32.mxu0 %vm396_vm3, %v946_v3  ;;  %765 = vmatprep.mubr.msk.f32.mxu1 %vm396_vm3, %v956_v5  ;;  %v493_v37 = vmax.f32 %v990_v35, %v996_v36  ;;  %v872_v39 = vmov 1.0|1.0   ;;  %v617_v40 = vld [vmem:[#allocation4] sm:$0x1]  ;;  %v730_v41 = vld [vmem:[%s705_s13 + $0x1] sm:$0x1] }
  0xb0   : > { %vm768_vm6 = vmpackc.low %vm381_vm5, %vm380_vm4  ;;  %794 = vset.pattern.permute.xlu0 %v871_v38  ;;  %v731_v42 = vld [vmem:[%s707_s16 + $0x1] sm:$0x1]  ;;  %vm374_vm8 = vcmp.gt.f32.partialorder %v730_v41, 0.0  ;;  %s727_s17 = sshll.u32 %s864_s3, 4  ;;  %v873_v62 = vmov 0.0   ;;  %s362_s3 = sadd.s32 1, %s864_s3  }
  0xb1   : > { %769 = vmatprep.subr.msk.bf16.mxu0 %vm768_vm6, %v872_v39  ;;  %595 = vperm.xlu0 %794, %v936_v1   ;;  %v494_v43 = vrot.slane %v493_v37, 4  ;;  %vm372_vm7 = vcmp.gt.s32.totalorder %v731_v42, 0  ;;  %v1011_v45 = vsel %vm374_vm8, 1, %v871_v38  ;;  %s703_s18 = scalar_lea.vmem [#allocation6], %s727_s17  ;;  %p359_p8 = scmp.ge.s32.totalorder %s362_s3, 7  }
  0xb2   : > { %771 = vmatpush3.bf16.msk.msra.mxu0 %vm768_vm6, %v872_v39  ;;  %v373_v44 = vsel %vm372_vm7, %v731_v42, 0  ;;  %v729_v60 = vld [vmem:[%s703_s18 + $0x18] sm:$0xff]  ;;  %v728_v61 = vld [vmem:[%s703_s18 + $0x10] sm:$0xff]  ;;  %v611_v34 = vrot.slane %v1011_v45, %v975_v13  ;;  %v624_v45 = vld [vmem:[%s1058_s4] sm:$0xff] (%p359_p8)  ;;  %s874_s1 = smov (%p359_p8), [#allocation9]  }
  0xb3   : > { %v495_v46 = vmax.f32 %v493_v37, %v494_v43  ;;  %v618_v47 = vsel %vm374_vm8, %v373_v44, %v617_v40  ;;  %620 = vst [vmem:[#allocation5] sm:$0x1] %v373_v44  ;;  %v389_v59 = vrot.slane %v373_v44, %v975_v13  ;;  %s693_s2 = sshll.u32 (%p359_p8), %s874_s1, 4  ;;  %s694_s2 = int_to_ptr.vmem [resolvable:$true] %s693_s2 }
  0xb4   : > { %619 = vst [vmem:[#allocation4] sm:$0x1] %v618_v47  ;;  %v487_v25 = vld [vmem:[#allocation3] sm:$0x1]  ;;  %vm612_vm11 = vcmp.eq.s32.totalorder %v611_v34, 1  ;;  %s836_s23 = scalar_lea.vmem (%p359_p8), %s694_s2, 32  ;;  %p837_p10 = scmp.lt.s32.totalorder (%p359_p8), %s694_s2, %s694_s2 }
  0xb5   : > { %759 = vmatmul.mubr.msk.f32.vlgmr.msra.gmra.mrb[0].mxu0 %vm396_vm3, %v951_v4  ;;  %600 = vperm.xlu0 %794, %v941_v2   ;;  %v496_v48 = vrot.slane %v495_v46, 2  ;;  %vm391_vm9 = vcmp.eq.s32.totalorder %v979_v15, %v389_v59  ;;  %vm390_vm10 = vcmp.eq.s32.totalorder %v972_v12, %v389_v59 }
  0xb6   : > { %v736_v63 = vsel %vm391_vm9, 1.0, %v873_v62  ;;  %v735_v9 = vsel %vm390_vm10, 1.0, %v873_v62 }
  0xb7   : > { %v497_v49 = vmax.f32 %v495_v46, %v496_v48 }
  0xb9   : > { %v498_v50 = vrot.slane %v497_v49, 1  ;;  %803 = vset.pattern.permute.xlu0 (%p359_p8), %v869_v0 }
  0xba   :  { %639 = vperm.xlu0 (%p359_p8), %803, %v624_v45  }
  0xbb   : > { %v499_v51 = vmax.f32 %v497_v49, %v498_v50 }
  0xbd   : > { %v500_v52 = vsub.f32 %v990_v35, %v499_v51  ;;  %v501_v53 = vsub.f32 %v996_v36, %v499_v51 }
  0xbf   : > { %v502_v54 = vmul.f32 1.442695, %v500_v52  ;;  %v504_v55 = vmul.f32 1.442695, %v501_v53 }
  0xc1   : > { %795 = vpow2.f32 %v502_v54 }
  0xc2   : > { %797 = vpow2.f32 %v504_v55 }
  0xcb   : > { %v796_v56 = vpop.eup %795 }
  0xcc   : > { %v798_v57 = vpop.eup %797 }
  0xcd   : > { %v772_v58 = vpack.c.bf16 %v798_v57, %v796_v56  ;;  %v743_v56 = vld [vmem:[#allocation4] ss:$0 sm:$0xff] (%p359_p8) }
  0xce   :  { %vm632_vm12 = vcmp.eq.s32.totalorder (%p359_p8), %v979_v15, %v743_v56  ;;  %vm631_vm13 = vcmp.eq.s32.totalorder (%p359_p8), %v972_v12, %v743_v56 }
  0xcf   : > { %773 = vmatprep.subr.bf16.mxu1 %v772_v58  ;;  %v745_v57 = vsel (%p359_p8), %vm632_vm12, 1.0, %v870_v20 }
  0xd0   : > { %775 = vmatpush3.bf16.msra.mxu1 %v772_v58  ;;  %v744_v58 = vsel (%p359_p8), %vm631_vm13, 1.0, %v870_v20 }
  0xd3   : > { %766 = vmatmul.mubr.msk.f32.vlgmr.msra.gmra.mrb[0].mxu1 %vm396_vm3, %v961_v6 }
 0x130   : > { %v596_v30 = vpop.permute.xlu0 %595 }
 0x134   : > { %v601_v40 = vpop.permute.xlu0 %600 }
 0x188   : > { %v760_v7 = vpop.f32.mrb[0].mxu0 }
 0x189   : > { %v475_v8 = vadd.f32 %v760_v7, %v729_v60  ;;  %v469_v10 = vpop.f32.mrb[1].mxu0 }
 0x18a   : > { %v470_v11 = vadd.f32 %v728_v61, %v469_v10 }
 0x18b   : > { %v479_v14 = vmul.f32 %v736_v63, %v475_v8 }
 0x18c   : > { %v478_v16 = vmul.f32 %v735_v9, %v470_v11 }
 0x18e   : > { %v480_v17 = vadd.f32 %v479_v14, %v478_v16 }
 0x190   : > { %v481_v18 = vrot.slane %v480_v17, 4 }
 0x192   : > { %v482_v19 = vadd.f32 %v481_v18, %v480_v17 }
 0x194   : > { %v483_v21 = vrot.slane %v482_v19, 2 }
 0x196   : > { %v484_v22 = vadd.f32 %v483_v21, %v482_v19 }
 0x198   : > { %v485_v23 = vrot.slane %v484_v22, 1 }
 0x19a   : > { %v486_v24 = vadd.f32 %v485_v23, %v484_v22 }
 0x19c   : > { %v488_v26 = vmul.f32 %v730_v41, %v486_v24 }
 0x19e   : > { %v489_v27 = vadd.f32 %v488_v26, %v487_v25 }
 0x1a0   : > { %490 = vst [vmem:[#allocation3] sm:$0x1] %v489_v27 }
 0x1a6   : > { %v767_v28 = vpop.f32.mrb[0].mxu1 }
 0x1a7   : > { %799 = vlog2.f32 %v767_v28  ;;  %v578_v29 = vpop.f32.mrb[1].mxu1  ;;  %v683_v22 = vld [vmem:[#allocation3] sm:$0x1] (%p359_p8) }
 0x1a8   : > { %801 = vlog2.f32 %v578_v29 }
 0x1b1   : > { %v800_v31 = vpop.eup %799 }
 0x1b2   : > { %v802_v32 = vpop.eup %801  ;;  %v590_v33 = vmul.f32 0.6931472, %v800_v31 }
 0x1b3   : > { %v588_v37 = vmul.f32 0.6931472, %v802_v32 }
 0x1b4   : > { %v592_v38 = vadd.f32 %v590_v33, %v499_v51 }
 0x1b5   : > { %v591_v39 = vadd.f32 %v588_v37, %v499_v51 }
 0x1b6   : > { %v604_v42 = vadd.f32 %v601_v40, %v592_v38  ;;  %361 = sbr.rel (!%p359_p8) target bundleno = 174 (0xae), region = 78 }
 0x1b7   : > { %v603_v41 = vadd.f32 %v596_v30, %v591_v39 }
 0x1b8   : > { %v606_v43 = vadd.f32 %v729_v60, %v604_v42 }
 0x1b9   : > { %v605_v44 = vadd.f32 %v728_v61, %v603_v41 }
 0x1ba   : > { %v614_v46 = vsel %vm612_vm11, %v606_v43, %v996_v36  ;;  %v625_v36 = vld [vmem:[%s1058_s4 + $0x8] sm:$0xff] (%p359_p8)  ;;  %s832_s4 = scalar_lea.vmem (%p359_p8), %s694_s2, 16 }
 0x1bb   : > { %v613_v47 = vsel %vm612_vm11, %v605_v44, %v990_v35  ;;  %616 = vst [vmem:[#allocation2 + $0x8] sm:$0xff] %v614_v46  ;;  %644 = vperm.xlu0 (%p359_p8), %803, %v625_v36   ;;  %v640_v35 = vpop.permute.xlu0 (%p359_p8), %639  ;;  %p833_p9 = scmp.ne.s32.totalorder (%p359_p8), %s694_s2, %s832_s4  ;;  %p838_p11 = scmp.lt.s32.totalorder (%p359_p8), %s836_s23, %s832_s4 }
 0x1bc   : > { %615 = vst [vmem:[#allocation2] sm:$0xff] %v613_v47  ;;  %v647_v60 = vmul.f32 (%p359_p8), %v744_v58, %v640_v35 }
 0x1bd   :  { %p839_p12 = por %p838_p11, %p837_p10 }
 0x1bf   :  { %p840_p13 = pnand %p839_p12, %p833_p9 }
 0x1c2   :  { %v657_v49 = vld [vmem:[#allocation2 + $0x8] sm:$0xff] }
 0x1c3   :  { %v656_v48 = vld [vmem:[#allocation2] sm:$0xff] }
 0x1c4   :  { %v658_v51 = vadd.f32 %v656_v48, %v640_v35 }
 0x23a   :  { %v645_v50 = vpop.permute.xlu0 %644 }
 0x23b   :  { %v659_v52 = vadd.f32 %v657_v49, %v645_v50  ;;  %v648_v59 = vmul.f32 %v745_v57, %v645_v50 }
 0x23d   :  { %v660_v53 = vmax.f32 %v658_v51, %v659_v52  ;;  %v649_v63 = vadd.f32 %v648_v59, %v647_v60 }
 0x23f   :  { %v661_v54 = vrot.slane %v660_v53, 4  ;;  %v650_v9 = vrot.slane %v649_v63, 4 }
 0x241   :  { %v662_v1 = vmax.f32 %v660_v53, %v661_v54  ;;  %v651_v14 = vadd.f32 %v650_v9, %v649_v63 }
 0x243   :  { %v663_v0 = vrot.slane %v662_v1, 2  ;;  %v652_v17 = vrot.slane %v651_v14, 2 }
 0x245   :  { %v664_v2 = vmax.f32 %v662_v1, %v663_v0  ;;  %v653_v12 = vadd.f32 %v652_v17, %v651_v14 }
 0x247   :  { %v665_v3 = vrot.slane %v664_v2, 1  ;;  %v654_v19 = vrot.slane %v653_v12, 1 }
 0x249   :  { %v666_v4 = vmax.f32 %v664_v2, %v665_v3  ;;  %v655_v21 = vadd.f32 %v654_v19, %v653_v12 }
 0x24b   :  { %v667_v5 = vsub.f32 %v658_v51, %v666_v4  ;;  %v668_v6 = vsub.f32 %v659_v52, %v666_v4  ;;  %v684_v25 = vadd.f32 %v683_v22, %v655_v21 }
 0x24d   :  { %v669_v13 = vmul.f32 1.442695, %v667_v5  ;;  %v671_v55 = vmul.f32 1.442695, %v668_v6 }
 0x24f   :  { %804 = vpow2.f32 %v669_v13 }
 0x250   :  { %806 = vpow2.f32 %v671_v55 }
 0x259   :  { %v805_v61 = vpop.eup %804 }
 0x25a   :  { %v807_v62 = vpop.eup %806 }
 0x25b   :  { %v673_v7 = vadd.f32 %v807_v62, %v805_v61 }
 0x25d   :  { %v674_v8 = vrot.slane %v673_v7, 4 }
 0x25f   :  { %v675_v10 = vadd.f32 %v674_v8, %v673_v7 }
 0x261   :  { %v676_v11 = vrot.slane %v675_v10, 2 }
 0x263   :  { %v677_v16 = vadd.f32 %v676_v11, %v675_v10 }
 0x265   :  { %v678_v15 = vrot.slane %v677_v16, 1 }
 0x267   :  { %v679_v18 = vadd.f32 %v678_v15, %v677_v16 }
 0x269   :  { %808 = vlog2.f32 %v679_v18 }
 0x273   :  { %v809_v20 = vpop.eup %808 }
 0x274   :  { %v681_v23 = vmul.f32 0.6931472, %v809_v20 }
 0x276   :  { %v682_v24 = vadd.f32 %v681_v23, %v666_v4 }
 0x278   :  { %v685_v26 = vsub.f32 %v682_v24, %v684_v25 }
 0x27a   :  { %686 = vst [vmem:[#allocation9] sm:$0x1] %v685_v26 }
 0x27b   :  { %843 = shalt.err (!%p840_p13)
}
 0x27c   :  { %s844_s25 = scalar_lea.hbm %s1062_s8, 16 }
 0x27d   :  { %p845_p0 = scmp.ne.s32.totalorder %s1062_s8, %s844_s25  ;;  %p848_p1 = scmp.lt.u32.totalorder %s844_s25, %s1062_s8 }
 0x27f   :  { %p850_p2 = pnand %p848_p1, %p845_p0 }
 0x281   :  { %853 = shalt.err (!%p850_p2)
}
 0x282   :  { %696 = dma.vmem_to_hbm [thread:$0]  %s694_s2, 16, %s1062_s8, [#allocation8]  }
 0x283   :  { %860 = dma.done.wait [#allocation8], 16  }
 0x284   :  { %861 = vsyncadd [#allocation8], 4294967280 }
 0x285   :  { %700 = vsyncpa [#allocation7], 1 }
 0x286   :  { %701 = vsyncpa [#allocation8], 1 }

</bundles_post_ra>
